<compile_context>
chip_gen: v7x
topology: tpu7x:2x2x1
jax: 0.10.0
libtpu: 0.0.40
codegen_flags: <defaults>
</compile_context>

<pallas_src>
import jax
import jax.numpy as jnp
from jax.experimental import pallas as pl
from jax.experimental.pallas import tpu as pltpu

BN_EPS = 1e-5


def conv_block(x_nchw, w_oihw, b, gamma, beta):
    """ConvBlock forward. x_nchw: (N, Cin, H, W); w_oihw: (Cout, Cin, KH, KW)."""
    N, Cin, H, W = x_nchw.shape
    Cout, _, KH, KW = w_oihw.shape
    H_out, W_out = H - KH + 1, W - KW + 1        # nn.Conv2d defaults: stride=1, padding=0
    P = H_out * W                                 # per-image positions in "full-W" layout
    Wpad = H * W + (KW - 1)                       # so every tap slice [off, off+P) is in range
    cnt = N * H_out * W_out                       # BN element count (valid positions only)
    inv_cnt = 1.0 / float(cnt)

    # ---- operand prep: O(input) data movement only (no im2col materialization) ----
    x_flat = x_nchw.reshape(N, Cin, H * W)                       # free reshape (contiguous)
    x_flat = jnp.pad(x_flat, ((0, 0), (0, 0), (0, Wpad - H * W)))
    x_flat = x_flat.astype(jnp.bfloat16)                         # bf16 MXU inputs
    # (Cout, Cin, KH, KW) -> (KH*KW, Cout, Cin): one small weight matrix per tap.
    w_taps = jnp.transpose(w_oihw, (2, 3, 0, 1)).reshape(KH * KW, Cout, Cin)
    w_taps = w_taps.astype(jnp.bfloat16)
    g2 = gamma.reshape(Cout, 1).astype(jnp.float32)
    be2 = beta.reshape(Cout, 1).astype(jnp.float32)
    # Conv bias `b` is mathematically cancelled by batch-stat BN mean subtraction,
    # so it is not passed to the kernels (one fewer operand + broadcast add).
    # TODO(synk): BN running_mean/running_var updates are training-mode side effects
    # that do not affect this forward output (batch stats are used), so omitted.

    # ---------- pass 1: conv as per-tap MXU matmuls + per-image channel stats ----------
    def conv_stats_kernel(x_ref, w_ref, y_ref, stats_ref):
        xb = x_ref[0]                                            # (Cin, Wpad) bf16 in VMEM
        acc = jnp.zeros((Cout, P), jnp.float32)                  # lane-dense accumulator
        for kh in range(KH):
            for kw in range(KW):
                off = kh * W + kw                                # constant lane offset per tap
                acc = acc + jnp.dot(w_ref[kh * KW + kw], xb[:, off:off + P],
                                    preferred_element_type=jnp.float32)
        y_ref[0] = acc
        # Per-channel sum / sum-of-squares over *valid* columns (wo < W_out), on the MXU.
        pos = jax.lax.broadcasted_iota(jnp.int32, (P, 1), 0)
        valid = (pos % W < W_out).astype(jnp.float32)            # (P, 1)
        s = jnp.dot(acc, valid, preferred_element_type=jnp.float32)          # (Cout, 1)
        ss = jnp.dot(acc * acc, valid, preferred_element_type=jnp.float32)   # (Cout, 1)
        stats_ref[0] = jnp.concatenate([s, ss], axis=1)          # (Cout, 2)

    y, stats = pl.pallas_call(
        conv_stats_kernel,
        out_shape=(jax.ShapeDtypeStruct((N, Cout, P), jnp.float32),
                   jax.ShapeDtypeStruct((N, Cout, 2), jnp.float32)),
        grid=(N,),
        in_specs=[
            pl.BlockSpec((1, Cin, Wpad), lambda n: (n, 0, 0)),
            pl.BlockSpec((KH * KW, Cout, Cin), lambda n: (0, 0, 0)),
        ],
        out_specs=(
            pl.BlockSpec((1, Cout, P), lambda n: (n, 0, 0)),
            pl.BlockSpec((1, Cout, 2), lambda n: (n, 0, 0)),
        ),
        compiler_params=pltpu.CompilerParams(
            dimension_semantics=("parallel",),
            vmem_limit_bytes=32 * 1024 * 1024),
    )(x_flat, w_taps)

    # ---------- pass 2: finalize batch stats, fold scale/shift, normalize + ReLU ----------
    def bn_relu_kernel(y_ref, stats_ref, g_ref, b_ref, o_ref):
        tot = jnp.sum(stats_ref[...], axis=0)                    # (Cout, 2): sum over batch
        mean = tot[:, 0:1] * inv_cnt                             # (Cout, 1)
        var = tot[:, 1:2] * inv_cnt - mean * mean                # biased var (PyTorch train BN)
        inv = jax.lax.rsqrt(var + BN_EPS)
        scale = g_ref[...] * inv                                 # folded per-channel scale
        shift = b_ref[...] - mean * scale
        o_ref[0] = jnp.maximum(y_ref[0] * scale + shift, 0.0)    # single FMA + ReLU per element

    out_full = pl.pallas_call(
        bn_relu_kernel,
        out_shape=jax.ShapeDtypeStruct((N, Cout, P), jnp.float32),
        grid=(N,),
        in_specs=[
            pl.BlockSpec((1, Cout, P), lambda n: (n, 0, 0)),
            pl.BlockSpec((N, Cout, 2), lambda n: (0, 0, 0)),
            pl.BlockSpec((Cout, 1), lambda n: (0, 0)),
            pl.BlockSpec((Cout, 1), lambda n: (0, 0)),
        ],
        out_specs=pl.BlockSpec((1, Cout, P), lambda n: (n, 0, 0)),
        compiler_params=pltpu.CompilerParams(
            dimension_semantics=("parallel",),
            vmem_limit_bytes=32 * 1024 * 1024),
    )(y, stats, g2, be2)

    # (N, Cout, H_out*W) is already NCHW-ordered; drop the (KW-1) invalid tail columns.
    return out_full.reshape(N, Cout, H_out, W)[..., :W_out]


def conv_block_ref(x, w, b, gamma, beta):
    """Pure-JAX reference matching PyTorch training-mode ConvBlock forward."""
    y = jax.lax.conv_general_dilated(
        x, w, (1, 1), "VALID",
        dimension_numbers=("NCHW", "OIHW", "NCHW"),
        precision=jax.lax.Precision.HIGHEST)
    y = y + b[None, :, None, None]
    mean = jnp.mean(y, axis=(0, 2, 3), keepdims=True)
    var = jnp.mean((y - mean) ** 2, axis=(0, 2, 3), keepdims=True)
    yhat = (y - mean) * jax.lax.rsqrt(var + BN_EPS)
    y = yhat * gamma[None, :, None, None] + beta[None, :, None, None]
    return jnp.maximum(y, 0.0)


if __name__ == "__main__":
    N, Cin, Cout, H, W, KH, KW = 2, 4, 8, 16, 16, 3, 3

    key = jax.random.PRNGKey(0)
    kx, kw_, kb = jax.random.split(key, 3)
    x = jax.random.normal(kx, (N, Cin, H, W), jnp.float32)
    w = jax.random.normal(kw_, (Cout, Cin, KH, KW), jnp.float32) * 0.1   # conv weight
    b = jax.random.normal(kb, (Cout,), jnp.float32) * 0.1                # conv bias
    gamma = jnp.ones((Cout,), jnp.float32)                               # BatchNorm2d weight init
    beta = jnp.zeros((Cout,), jnp.float32)                               # BatchNorm2d bias init

    out = jax.block_until_ready(conv_block(x, w, b, gamma, beta))
    ref = conv_block_ref(x, w, b, gamma, beta)

    assert out.shape == (N, Cout, H - KH + 1, W - KW + 1), out.shape
    max_err = float(jnp.max(jnp.abs(out - ref)))
    assert jnp.allclose(out, ref, atol=2e-2, rtol=2e-2), max_err
    print("KERNEL_OK")
</pallas_src>

<mosaic_0001>
module attributes {stable_mosaic.version = 11 : i64} {
  func.func @conv_stats_kernel(%arg0: i32, %arg1: memref<1x4x258xbf16, #tpu.memory_space<vmem>>, %arg2: memref<9x8x4xbf16, #tpu.memory_space<vmem>>, %arg3: memref<1x8x224xf32, #tpu.memory_space<vmem>>, %arg4: memref<1x8x2xf32, #tpu.memory_space<vmem>>) attributes {dimension_semantics = [#tpu.dimension_semantics<parallel>], iteration_bounds = array<i64: 2>, scalar_prefetch = 0 : i64, scratch_operands = 0 : i64, tpu.core_type = #tpu.core_type<tc>, window_params = [{transform_indices = @transform_0, window_bounds = array<i64: 1, 4, 258>}, {pipeline_mode = #tpu.pipeline_mode<synchronous>, transform_indices = @transform_1, window_bounds = array<i64: 9, 8, 4>}, {transform_indices = @transform_2, window_bounds = array<i64: 1, 8, 224>}, {transform_indices = @transform_3, window_bounds = array<i64: 1, 8, 2>}]} {
    %c0 = arith.constant 0 : index
    %c0_0 = arith.constant 0 : index
    %c0_1 = arith.constant 0 : index
    %0 = vector.load %arg1[%c0, %c0_0, %c0_1] : memref<1x4x258xbf16, #tpu.memory_space<vmem>>, vector<1x4x258xbf16>
    %1 = vector.shape_cast %0 : vector<1x4x258xbf16> to vector<4x258xbf16>
    %cst = arith.constant 0.000000e+00 : f32
    %2 = vector.broadcast %cst : f32 to vector<8x224xf32>
    %c0_2 = arith.constant 0 : index
    %c0_3 = arith.constant 0 : index
    %c0_4 = arith.constant 0 : index
    %3 = vector.load %arg2[%c0_2, %c0_3, %c0_4] : memref<9x8x4xbf16, #tpu.memory_space<vmem>>, vector<1x8x4xbf16>
    %4 = vector.shape_cast %3 : vector<1x8x4xbf16> to vector<8x4xbf16>
    %5 = vector.extract_strided_slice %1 {offsets = [0, 0], sizes = [4, 224], strides = [1, 1]} : vector<4x258xbf16> to vector<4x224xbf16>
    %cst_5 = arith.constant dense<0.000000e+00> : vector<8x224xf32>
    %6 = tpu.matmul %4, %5, %cst_5 {dimension_numbers = #tpu.dot_dimension_numbers<[1], [0], [0], [1], [0, 0, 1, 1], [], []>} : vector<8x4xbf16>, vector<4x224xbf16>, vector<8x224xf32> -> vector<8x224xf32>
    %7 = arith.addf %2, %6 : vector<8x224xf32>
    %c1 = arith.constant 1 : index
    %c0_6 = arith.constant 0 : index
    %c0_7 = arith.constant 0 : index
    %8 = vector.load %arg2[%c1, %c0_6, %c0_7] : memref<9x8x4xbf16, #tpu.memory_space<vmem>>, vector<1x8x4xbf16>
    %9 = vector.shape_cast %8 : vector<1x8x4xbf16> to vector<8x4xbf16>
    %10 = vector.extract_strided_slice %1 {offsets = [0, 1], sizes = [4, 224], strides = [1, 1]} : vector<4x258xbf16> to vector<4x224xbf16>
    %cst_8 = arith.constant dense<0.000000e+00> : vector<8x224xf32>
    %11 = tpu.matmul %9, %10, %cst_8 {dimension_numbers = #tpu.dot_dimension_numbers<[1], [0], [0], [1], [0, 0, 1, 1], [], []>} : vector<8x4xbf16>, vector<4x224xbf16>, vector<8x224xf32> -> vector<8x224xf32>
    %12 = arith.addf %7, %11 : vector<8x224xf32>
    %c2 = arith.constant 2 : index
    %c0_9 = arith.constant 0 : index
    %c0_10 = arith.constant 0 : index
    %13 = vector.load %arg2[%c2, %c0_9, %c0_10] : memref<9x8x4xbf16, #tpu.memory_space<vmem>>, vector<1x8x4xbf16>
    %14 = vector.shape_cast %13 : vector<1x8x4xbf16> to vector<8x4xbf16>
    %15 = vector.extract_strided_slice %1 {offsets = [0, 2], sizes = [4, 224], strides = [1, 1]} : vector<4x258xbf16> to vector<4x224xbf16>
    %cst_11 = arith.constant dense<0.000000e+00> : vector<8x224xf32>
    %16 = tpu.matmul %14, %15, %cst_11 {dimension_numbers = #tpu.dot_dimension_numbers<[1], [0], [0], [1], [0, 0, 1, 1], [], []>} : vector<8x4xbf16>, vector<4x224xbf16>, vector<8x224xf32> -> vector<8x224xf32>
    %17 = arith.addf %12, %16 : vector<8x224xf32>
    %c3 = arith.constant 3 : index
    %c0_12 = arith.constant 0 : index
    %c0_13 = arith.constant 0 : index
    %18 = vector.load %arg2[%c3, %c0_12, %c0_13] : memref<9x8x4xbf16, #tpu.memory_space<vmem>>, vector<1x8x4xbf16>
    %19 = vector.shape_cast %18 : vector<1x8x4xbf16> to vector<8x4xbf16>
    %20 = vector.extract_strided_slice %1 {offsets = [0, 16], sizes = [4, 224], strides = [1, 1]} : vector<4x258xbf16> to vector<4x224xbf16>
    %cst_14 = arith.constant dense<0.000000e+00> : vector<8x224xf32>
    %21 = tpu.matmul %19, %20, %cst_14 {dimension_numbers = #tpu.dot_dimension_numbers<[1], [0], [0], [1], [0, 0, 1, 1], [], []>} : vector<8x4xbf16>, vector<4x224xbf16>, vector<8x224xf32> -> vector<8x224xf32>
    %22 = arith.addf %17, %21 : vector<8x224xf32>
    %c4 = arith.constant 4 : index
    %c0_15 = arith.constant 0 : index
    %c0_16 = arith.constant 0 : index
    %23 = vector.load %arg2[%c4, %c0_15, %c0_16] : memref<9x8x4xbf16, #tpu.memory_space<vmem>>, vector<1x8x4xbf16>
    %24 = vector.shape_cast %23 : vector<1x8x4xbf16> to vector<8x4xbf16>
    %25 = vector.extract_strided_slice %1 {offsets = [0, 17], sizes = [4, 224], strides = [1, 1]} : vector<4x258xbf16> to vector<4x224xbf16>
    %cst_17 = arith.constant dense<0.000000e+00> : vector<8x224xf32>
    %26 = tpu.matmul %24, %25, %cst_17 {dimension_numbers = #tpu.dot_dimension_numbers<[1], [0], [0], [1], [0, 0, 1, 1], [], []>} : vector<8x4xbf16>, vector<4x224xbf16>, vector<8x224xf32> -> vector<8x224xf32>
    %27 = arith.addf %22, %26 : vector<8x224xf32>
    %c5 = arith.constant 5 : index
    %c0_18 = arith.constant 0 : index
    %c0_19 = arith.constant 0 : index
    %28 = vector.load %arg2[%c5, %c0_18, %c0_19] : memref<9x8x4xbf16, #tpu.memory_space<vmem>>, vector<1x8x4xbf16>
    %29 = vector.shape_cast %28 : vector<1x8x4xbf16> to vector<8x4xbf16>
    %30 = vector.extract_strided_slice %1 {offsets = [0, 18], sizes = [4, 224], strides = [1, 1]} : vector<4x258xbf16> to vector<4x224xbf16>
    %cst_20 = arith.constant dense<0.000000e+00> : vector<8x224xf32>
    %31 = tpu.matmul %29, %30, %cst_20 {dimension_numbers = #tpu.dot_dimension_numbers<[1], [0], [0], [1], [0, 0, 1, 1], [], []>} : vector<8x4xbf16>, vector<4x224xbf16>, vector<8x224xf32> -> vector<8x224xf32>
    %32 = arith.addf %27, %31 : vector<8x224xf32>
    %c6 = arith.constant 6 : index
    %c0_21 = arith.constant 0 : index
    %c0_22 = arith.constant 0 : index
    %33 = vector.load %arg2[%c6, %c0_21, %c0_22] : memref<9x8x4xbf16, #tpu.memory_space<vmem>>, vector<1x8x4xbf16>
    %34 = vector.shape_cast %33 : vector<1x8x4xbf16> to vector<8x4xbf16>
    %35 = vector.extract_strided_slice %1 {offsets = [0, 32], sizes = [4, 224], strides = [1, 1]} : vector<4x258xbf16> to vector<4x224xbf16>
    %cst_23 = arith.constant dense<0.000000e+00> : vector<8x224xf32>
    %36 = tpu.matmul %34, %35, %cst_23 {dimension_numbers = #tpu.dot_dimension_numbers<[1], [0], [0], [1], [0, 0, 1, 1], [], []>} : vector<8x4xbf16>, vector<4x224xbf16>, vector<8x224xf32> -> vector<8x224xf32>
    %37 = arith.addf %32, %36 : vector<8x224xf32>
    %c7 = arith.constant 7 : index
    %c0_24 = arith.constant 0 : index
    %c0_25 = arith.constant 0 : index
    %38 = vector.load %arg2[%c7, %c0_24, %c0_25] : memref<9x8x4xbf16, #tpu.memory_space<vmem>>, vector<1x8x4xbf16>
    %39 = vector.shape_cast %38 : vector<1x8x4xbf16> to vector<8x4xbf16>
    %40 = vector.extract_strided_slice %1 {offsets = [0, 33], sizes = [4, 224], strides = [1, 1]} : vector<4x258xbf16> to vector<4x224xbf16>
    %cst_26 = arith.constant dense<0.000000e+00> : vector<8x224xf32>
    %41 = tpu.matmul %39, %40, %cst_26 {dimension_numbers = #tpu.dot_dimension_numbers<[1], [0], [0], [1], [0, 0, 1, 1], [], []>} : vector<8x4xbf16>, vector<4x224xbf16>, vector<8x224xf32> -> vector<8x224xf32>
    %42 = arith.addf %37, %41 : vector<8x224xf32>
    %c8 = arith.constant 8 : index
    %c0_27 = arith.constant 0 : index
    %c0_28 = arith.constant 0 : index
    %43 = vector.load %arg2[%c8, %c0_27, %c0_28] : memref<9x8x4xbf16, #tpu.memory_space<vmem>>, vector<1x8x4xbf16>
    %44 = vector.shape_cast %43 : vector<1x8x4xbf16> to vector<8x4xbf16>
    %45 = vector.extract_strided_slice %1 {offsets = [0, 34], sizes = [4, 224], strides = [1, 1]} : vector<4x258xbf16> to vector<4x224xbf16>
    %cst_29 = arith.constant dense<0.000000e+00> : vector<8x224xf32>
    %46 = tpu.matmul %44, %45, %cst_29 {dimension_numbers = #tpu.dot_dimension_numbers<[1], [0], [0], [1], [0, 0, 1, 1], [], []>} : vector<8x4xbf16>, vector<4x224xbf16>, vector<8x224xf32> -> vector<8x224xf32>
    %47 = arith.addf %42, %46 : vector<8x224xf32>
    %c0_30 = arith.constant 0 : index
    %c0_31 = arith.constant 0 : index
    %c0_32 = arith.constant 0 : index
    %48 = vector.load %arg3[%c0_30, %c0_31, %c0_32] : memref<1x8x224xf32, #tpu.memory_space<vmem>>, vector<1x8x224xf32>
    %49 = vector.shape_cast %48 : vector<1x8x224xf32> to vector<8x224xf32>
    %50 = vector.shape_cast %47 : vector<8x224xf32> to vector<1x8x224xf32>
    tpu.vector_store %arg3[%c0_30, %c0_31, %c0_32], %50 {strides = array<i32>} : memref<1x8x224xf32, #tpu.memory_space<vmem>>, vector<1x8x224xf32>,
    %51 = tpu.iota {dimensions = array<i32: 0>} : vector<224x1xi32>
    %c16_i32 = arith.constant 16 : i32
    %c0_i32 = arith.constant 0 : i32
    %52 = arith.cmpi eq, %c16_i32, %c0_i32 : i32
    %c1_i32 = arith.constant 1 : i32
    %53 = arith.select %52, %c1_i32, %c16_i32 : i32
    %54 = vector.broadcast %53 : i32 to vector<224x1xi32>
    %55 = arith.remsi %51, %54 : vector<224x1xi32>
    %c0_i32_33 = arith.constant 0 : i32
    %56 = vector.broadcast %c0_i32_33 : i32 to vector<224x1xi32>
    %57 = arith.cmpi ne, %55, %56 : vector<224x1xi32>
    %c0_i32_34 = arith.constant 0 : i32
    %58 = vector.broadcast %c0_i32_34 : i32 to vector<224x1xi32>
    %59 = arith.cmpi slt, %55, %58 : vector<224x1xi32>
    %c0_i32_35 = arith.constant 0 : i32
    %60 = arith.cmpi slt, %53, %c0_i32_35 : i32
    %61 = vector.broadcast %60 : i1 to vector<224x1xi1>
    %62 = vector.broadcast %61 : vector<224x1xi1> to vector<224x1xi1>
    %63 = arith.xori %59, %62 : vector<224x1xi1>
    %64 = arith.andi %63, %57 : vector<224x1xi1>
    %65 = vector.broadcast %53 : i32 to vector<224x1xi32>
    %66 = arith.addi %55, %65 : vector<224x1xi32>
    %67 = arith.select %64, %66, %55 : vector<224x1xi1>, vector<224x1xi32>
    %c14_i32 = arith.constant 14 : i32
    %68 = vector.broadcast %c14_i32 : i32 to vector<224x1xi32>
    %69 = arith.cmpi slt, %67, %68 : vector<224x1xi32>
    %70 = arith.extui %69 : vector<224x1xi1> to vector<224x1xi32>
    %71 = arith.sitofp %70 : vector<224x1xi32> to vector<224x1xf32>
    %cst_36 = arith.constant dense<0.000000e+00> : vector<8x1xf32>
    %72 = tpu.matmul %47, %71, %cst_36 {dimension_numbers = #tpu.dot_dimension_numbers<[1], [0], [0], [1], [0, 0, 1, 1], [], []>} : vector<8x224xf32>, vector<224x1xf32>, vector<8x1xf32> -> vector<8x1xf32>
    %73 = arith.mulf %47, %47 : vector<8x224xf32>
    %cst_37 = arith.constant dense<0.000000e+00> : vector<8x1xf32>
    %74 = tpu.matmul %73, %71, %cst_37 {dimension_numbers = #tpu.dot_dimension_numbers<[1], [0], [0], [1], [0, 0, 1, 1], [], []>} : vector<8x224xf32>, vector<224x1xf32>, vector<8x1xf32> -> vector<8x1xf32>
    %75 = tpu.concatenate %72, %74 in 1 : vector<8x1xf32>, vector<8x1xf32> -> vector<8x2xf32>
    %c0_38 = arith.constant 0 : index
    %c0_39 = arith.constant 0 : index
    %c0_40 = arith.constant 0 : index
    %76 = vector.load %arg4[%c0_38, %c0_39, %c0_40] : memref<1x8x2xf32, #tpu.memory_space<vmem>>, vector<1x8x2xf32>
    %77 = vector.shape_cast %76 : vector<1x8x2xf32> to vector<8x2xf32>
    %78 = vector.shape_cast %75 : vector<8x2xf32> to vector<1x8x2xf32>
    tpu.vector_store %arg4[%c0_38, %c0_39, %c0_40], %78 {strides = array<i32>} : memref<1x8x2xf32, #tpu.memory_space<vmem>>, vector<1x8x2xf32>,
    return
  }
  func.func @transform_0(%arg0: i32) -> (i32, i32, i32) {
    %c0_i32 = arith.constant 0 : i32
    %c0_i32_0 = arith.constant 0 : i32
    %c0_i32_1 = arith.constant 0 : i32
    return %arg0, %c0_i32, %c0_i32_0 : i32, i32, i32
  }
  func.func @transform_1(%arg0: i32) -> (i32, i32, i32) {
    %c0_i32 = arith.constant 0 : i32
    %c0_i32_0 = arith.constant 0 : i32
    %c0_i32_1 = arith.constant 0 : i32
    %c0_i32_2 = arith.constant 0 : i32
    return %c0_i32, %c0_i32_0, %c0_i32_1 : i32, i32, i32
  }
  func.func @transform_2(%arg0: i32) -> (i32, i32, i32) {
    %c0_i32 = arith.constant 0 : i32
    %c0_i32_0 = arith.constant 0 : i32
    %c0_i32_1 = arith.constant 0 : i32
    return %arg0, %c0_i32, %c0_i32_0 : i32, i32, i32
  }
  func.func @transform_3(%arg0: i32) -> (i32, i32, i32) {
    %c0_i32 = arith.constant 0 : i32
    %c0_i32_0 = arith.constant 0 : i32
    %c0_i32_1 = arith.constant 0 : i32
    return %arg0, %c0_i32, %c0_i32_0 : i32, i32, i32
  }
}

</mosaic_0001>

<bundles_post_ra>
// kernel: tpu_custom_call.1
= control target key start
LH: loop header
LB: loop body
LE: loop exit
PB: predicated region body
PF: predicated region fallthrough
CT: control target
= control target key end

     0   :  { %9 = vsyncpa [#allocation3], 0  ;;  %s2202_s0 = inlined_call_operand.vmem [shape: bf16[2,4,258], index: 0, kind: input, shape index: {}]   ;;  %s2203_s1 = inlined_call_operand.vmem [shape: bf16[9,8,4], index: 1, kind: input, shape index: {}]   ;;  %s2204_s2 = inlined_call_operand.hbm [shape: f32[2,8,224], index: 2, kind: output, shape index: {0}]   ;;  %s2205_s3 = inlined_call_operand.vmem [shape: f32[2,8,2], index: 3, kind: output, shape index: {1}]  }
   0x1   :  { %11 = vsyncpa [#allocation3 + $0x1], 0  ;;  %s1802_s12 = smov 0   ;;  %s1804_s13 = smov 0  }
   0x2   :  { %s1806_s14 = smov 0   ;;  %s1808_s15 = smov 0  }
   0x3 LB: > { %s1823_s16 = sadd.s32 4294967295, %s1765_s15   ;;  %s1449_s17 = sadd.s32 4294967294, %s1765_s15   ;;  %s1765_s15 = sphi %s1808_s15, %s2269_s15   ;;  %s1761_s14 = sphi %s1806_s14, %s2268_s14   ;;  %s1757_s13 = sphi %s1804_s13, %s2267_s13   ;;  %s1753_s12 = sphi %s1802_s12, %s2266_s12  }
   0x4   : > { %s1827_s18 = sadd.s32 1, %s1765_s15   ;;  %s71_s19 = sadd.s32 1, %s1761_s14 }
   0x5   : > { %s68_s20 = ssub.s32 %s1765_s15, %s1827_s18  ;;  %p81_p0 = scmp.ne.s32.totalorder %s1761_s14, %s1757_s13 }
   0x6   : > { %p69_p1 = scmp.eq.s32.totalorder %s68_s20, 0  ;;  %p82_p2 = scmp.eq.s32.totalorder %s1823_s16, 1 }
   0x7   : > { %p87_p3 = scmp.ne.s32.totalorder %s1757_s13, %s1753_s12  ;;  %p88_p4 = scmp.eq.s32.totalorder %s1449_s17, 1 }
   0x8   : > { %s1838_s21 = scalar_select %p69_p1, %s1761_s14, %s71_s19  }
   0x9   : > { %p1840_p5 = por %p82_p2, %p81_p0  ;;  %p1844_p6 = por %p88_p4, %p87_p3 }
   0xa   : > { %p1452_p7 = scmp.ge.s32.totalorder %s1765_s15, 1  ;;  %p143_p8 = scmp.lt.s32.totalorder %s1765_s15, 3 }
   0xc   : > { %p144_p9 = pnand %p1452_p7, %p143_p8 }
   0xd   : > { %p171_p10 = scmp.lt.s32.totalorder (!%p144_p9), %s1823_s16, 1  ;;  %v189_v0 = vlaneseq (!%p144_p9)  ;;  %v1767_v1 = vmov (!%p144_p9), 1983009808   ;;  %v1768_v5 = vmov (!%p144_p9), 0   ;;  %s1769_s29 = smov (!%p144_p9), 127   ;;  %v1777_v13 = vmov (!%p144_p9), 0.0|0.0  }
   0xe   : > { %147 = sbr.rel (%p144_p9) target bundleno = 848 (0x350), region = 28  ;;  %v187_v2 = vunpack.c.l.s4 (!%p144_p9), %v1767_v1  ;;  %243 = vmatprep.mubr.bf16.mxu0 (!%p144_p9), %v1768_v5  ;;  %s1770_s30 = smov (!%p144_p9), 126   ;;  %1532 = vmatprep.subr.bf16.mxu1 (!%p144_p9), %v1777_v13  ;;  %vm1778_vm1 = vmmov (!%p144_p9), 1   ;;  %v1779_v21 = vmov (!%p144_p9), 1.0|1.0   ;;  %vm2208_vm12 = vcmask (!%p144_p9), 1041408  }
   0xf   : > { %v1854_v3 = vshrl.u32 (!%p144_p9), %v189_v0, 7  ;;  %s1771_s4 = smov (!%p144_p9), 112   ;;  %s1772_s5 = smov (!%p144_p9), 111   ;;  %vm198_vm14 = vcmask (!%p144_p9), 1039360   ;;  %v1456_v45 = vld [vmem:[%s2203_s1 + $0x4] sm:$0xf] (!%p144_p9) }
  0x10   : > { %v188_v4 = vunpack.c.0.s8 (!%p144_p9), %v187_v2  ;;  %s1773_s6 = smov (!%p144_p9), 110   ;;  %s1774_s7 = smov (!%p144_p9), 96   ;;  %v2233_v55 = vmov (!%p144_p9), 0  ;;  %v182_v58 = vld [vmem:[%s2203_s1] sm:$0xf] (!%p144_p9)  ;;  %v2235_v61 = vmov (!%p144_p9), 0 }
  0x11   : > { %s1775_s8 = smov (!%p144_p9), 95   ;;  %s1776_s9 = smov (!%p144_p9), 94   ;;  %v741_v12 = vadd.s32 (!%p144_p9), 8, %v1854_v3  ;;  %v743_v14 = vadd.s32 (!%p144_p9), 24, %v1854_v3  ;;  %v745_v15 = vadd.s32 (!%p144_p9), 40, %v1854_v3  ;;  %v747_v19 = vadd.s32 (!%p144_p9), 56, %v1854_v3 }
  0x12   : > { %v191_v6 = vsub.s32 (!%p144_p9), %v188_v4, %v1854_v3  ;;  %v749_v24 = vadd.s32 (!%p144_p9), 72, %v1854_v3  ;;  %v751_v27 = vadd.s32 (!%p144_p9), 88, %v1854_v3  ;;  %v753_v30 = vadd.s32 (!%p144_p9), 104, %v1854_v3  ;;  %s162_s11 = sand.u32 (!%p144_p9), 1, %s1757_s13   ;;  %s1531_s20 = sshll.u32 (!%p144_p9), %s1823_s16, 8 }
  0x13   : > { %v779_v16 = vand.u32 (!%p144_p9), 15, %v741_v12  ;;  %v793_v17 = vand.u32 (!%p144_p9), 15, %v743_v14  ;;  %v807_v18 = vand.u32 (!%p144_p9), 15, %v745_v15  ;;  %v821_v23 = vand.u32 (!%p144_p9), 15, %v747_v19  ;;  %v1464_v12 = vld [vmem:[%s2203_s1 + $0xc] sm:$0xf] (!%p144_p9) }
  0x14   : > { %v835_v26 = vand.u32 (!%p144_p9), 15, %v749_v24  ;;  %v849_v29 = vand.u32 (!%p144_p9), 15, %v751_v27  ;;  %v863_v32 = vand.u32 (!%p144_p9), 15, %v753_v30  ;;  %v755_v33 = vadd.s32 (!%p144_p9), 120, %v1854_v3  ;;  %v1467_v19 = vld [vmem:[%s2203_s1 + $0x10] sm:$0xf] (!%p144_p9) }
  0x15   : > { %s1852_s24 = scalar_select %p171_p10, %s1823_s16, 1  ;;  %vm1105_vm0 = vcmp.lt.s32.totalorder %v779_v16, 14  ;;  %vm1107_vm3 = vcmp.lt.s32.totalorder %v793_v17, 14  ;;  %vm1109_vm5 = vcmp.lt.s32.totalorder %v807_v18, 14  ;;  %vm1111_vm7 = vcmp.lt.s32.totalorder %v821_v23, 14 }
  0x16   : > { %vm1890_vm2 = vmpackc.low %vm1105_vm0, %vm1778_vm1  ;;  %vm1113_vm9 = vcmp.lt.s32.totalorder %v835_v26, 14  ;;  %vm1115_vm11 = vcmp.lt.s32.totalorder %v849_v29, 14  ;;  %vm1117_vm15 = vcmp.lt.s32.totalorder %v863_v32, 14  ;;  %v877_v36 = vand.u32 15, %v755_v33  ;;  %v1470_v32 = vld [vmem:[%s2203_s1 + $0x14] sm:$0xf] }
  0x17   : > { %s1648_s25 = smul.u32 6, %s1852_s24  ;;  %1534 = vmatpush1.bf16.msk.msra.mxu1 %vm1890_vm2, %v1779_v21  ;;  %vm1899_vm4 = vmpackc.low %vm1107_vm3, %vm1778_vm1  ;;  %v757_v37 = vadd.s32 136, %v1854_v3  ;;  %v759_v44 = vadd.s32 152, %v1854_v3  ;;  %v761_v50 = vadd.s32 168, %v1854_v3  ;;  %v763_v53 = vadd.s32 184, %v1854_v3  ;;  %s1453_s17 = sshll.u32 %s162_s11, 4 }
  0x18   : > { %1535 = vmatprep.subr.bf16.mxu1 %v1777_v13  ;;  %vm1909_vm6 = vmpackc.low %vm1109_vm5, %vm1778_vm1  ;;  %vm1119_vm3 = vcmp.lt.s32.totalorder %v877_v36, 14  ;;  %vm2206_vm5 = vcmask 31744   ;;  %v765_v57 = vadd.s32 200, %v1854_v3  ;;  %v767_v63 = vadd.s32 216, %v1854_v3  ;;  %s2093_s19 = scalar_lea.vmem [#allocation2], %s1453_s17 }
  0x19   : > { %s175_s28 = scalar_lea.vmem %s2202_s0, %s1648_s25  ;;  %vm1919_vm8 = vmpackc.low %vm1111_vm7, %vm1778_vm1  ;;  %v891_v43 = vand.u32 15, %v757_v37  ;;  %v905_v49 = vand.u32 15, %v759_v44  ;;  %v919_v52 = vand.u32 15, %v761_v50  ;;  %v933_v56 = vand.u32 15, %v763_v53  ;;  %s1363_s25 = sshll.u32 %s2093_s19, 4  ;;  %s1364_s25 = int_to_ptr.vmem [resolvable:$true] %s1363_s25 }
  0x1a   : > { %v181_v7 = vld [vmem:[%s175_s28] sm:$0x3f]  ;;  %vm1929_vm10 = vmpackc.low %vm1113_vm9, %vm1778_vm1  ;;  %v947_v62 = vand.u32 15, %v765_v57  ;;  %v2237_v0 = vmov 0  ;;  %v961_v2 = vand.u32 15, %v767_v63  ;;  %s2160_s28 = scalar_lea.hbm %s2204_s2, %s1531_s20 }
  0x1b   : > { %v1862_v8 = vrot.slane %v181_v7, %v191_v6  ;;  %v604_v10 = vcombine.high %v181_v7, %v181_v7  ;;  %1537 = vmatpush1.bf16.msk.msra.mxu1 %vm1899_vm4, %v1779_v21  ;;  %vm1939_vm13 = vmpackc.low %vm1115_vm11, %vm1778_vm1  ;;  %vm1121_vm9 = vcmp.lt.s32.totalorder %v891_v43, 14 }
  0x1c   : > { %1538 = vmatprep.subr.bf16.mxu1 %v1777_v13  ;;  %vm1950_vm0 = vmpackc.low %vm1117_vm15, %vm1778_vm1  ;;  %vm1123_vm15 = vcmp.lt.s32.totalorder %v905_v49, 14 }
  0x1d   : > { %194 = vrot.lane.b32.xlu0 %v1862_v8, %s1769_s29  ;;  %v1867_v9 = vcombine.high %v1862_v8, %v1862_v8  ;;  %304 = vrot.lane.b32.xlu1 %v1862_v8, %s1770_s30  ;;  %v611_v11 = vrot.slane %v604_v10, %v191_v6  ;;  %v256_v46 = vsel %vm2208_vm12, %v1862_v8, 0  ;;  %vm1968_vm7 = vmpackc.low %vm1119_vm3, %vm1778_vm1  ;;  %v1461_v6 = vld [vmem:[%s2203_s1 + $0x8] sm:$0xf] }
  0x1e   : > { %vm1981_vm11 = vmpackc.low %vm1121_vm9, %vm1778_vm1  ;;  %vm1125_vm9 = vcmp.lt.s32.totalorder %v919_v52, 14 }
  0x1f   : > { %1540 = vmatpush1.bf16.msk.msra.mxu1 %vm1909_vm6, %v1779_v21  ;;  %vm1991_vm3 = vmpackc.low %vm1123_vm15, %vm1778_vm1  ;;  %vm1127_vm15 = vcmp.lt.s32.totalorder %v933_v56, 14 }
  0x20   : > { %1541 = vmatprep.subr.bf16.mxu1 %v1777_v13  ;;  %v2234_v55 = vsel %vm1991_vm3, 4294967295, %v2233_v55 }
  0x21   : > { %196 = vrot.lane.b32.xlu0 %v1867_v9, %s1769_s29  ;;  %306 = vrot.lane.b32.xlu1 %v1867_v9, %s1770_s30  ;;  %s1345_s29 = scalar_lea.sflag [#allocation3], %s162_s11  ;;  %s1703_s30 = scalar_lea.vmem %s1364_s25, 256 }
  0x22   : > { %p1704_p11 = scmp.ne.s32.totalorder %s1364_s25, %s1703_s30 }
  0x23   : > { %1543 = vmatpush1.bf16.msk.msra.mxu1 %vm1919_vm8, %v1779_v21 }
  0x24   : > { %1544 = vmatprep.subr.bf16.mxu1 %v1777_v13  ;;  %p1705_p12 = pnand %p1704_p11, %p1840_p5 }
  0x25   : > { %366 = vrot.lane.b32.xlu1 %v1867_v9, %s1771_s4  ;;  %364 = vrot.lane.b32.xlu0 %v1862_v8, %s1771_s4  ;;  %s1780_s4 = smov [#allocation2]  }
  0x26   : > { %p1706_p13 = pneg %p1705_p12 }
  0x27   : > { %1546 = vmatpush1.bf16.msk.msra.mxu1 %vm1929_vm10, %v1779_v21 }
  0x28   : > { %1547 = vmatprep.subr.bf16.mxu1 %v1777_v13 }
  0x29   : > { %426 = vrot.lane.b32.xlu1 %v1867_v9, %s1772_s5  ;;  %424 = vrot.lane.b32.xlu0 %v1862_v8, %s1772_s5  ;;  %s1707_s5 = sshll.u32 %s1780_s4, 4  ;;  %s1708_s5 = int_to_ptr.vmem [resolvable:$false] %s1707_s5 }
  0x2a   : > { %p1710_p0 = scmp.lt.s32.totalorder %s1364_s25, %s1708_s5 }
  0x2b   : > { %1549 = vmatpush1.bf16.msk.msra.mxu1 %vm1939_vm13, %v1779_v21 }
  0x2c   : > { %1550 = vmatprep.subr.bf16.mxu1 %v1777_v13 }
  0x2d   : > { %486 = vrot.lane.b32.xlu1 %v1867_v9, %s1773_s6  ;;  %484 = vrot.lane.b32.xlu0 %v1862_v8, %s1773_s6  ;;  %s1709_s6 = scalar_lea.vmem %s1708_s5, 512 }
  0x2e   : > { %p1711_p1 = scmp.lt.s32.totalorder %s1709_s6, %s1703_s30 }
  0x2f   : > { %1552 = vmatpush1.bf16.msk.msra.mxu1 %vm1950_vm0, %v1779_v21 }
  0x30   : > { %1553 = vmatprep.subr.bf16.mxu1 %v1777_v13  ;;  %p1712_p2 = por %p1711_p1, %p1710_p0 }
  0x31   : > { %546 = vrot.lane.b32.xlu1 %v1867_v9, %s1774_s7  ;;  %544 = vrot.lane.b32.xlu0 %v1862_v8, %s1774_s7 }
  0x32   : > { %p1713_p3 = pnand %p1712_p2, %p1706_p13 }
  0x33   : > { %1555 = vmatpush1.bf16.msk.msra.mxu1 %vm1968_vm7, %v1779_v21 }
  0x34   : > { %1556 = vmatprep.subr.bf16.mxu1 %v1777_v13 }
  0x35   : > { %612 = vrot.lane.b32.xlu0 %v1862_v8, %s1775_s8  ;;  %614 = vrot.lane.b32.xlu1 %v1867_v9, %s1775_s8 }
  0x37   : > { %1558 = vmatpush1.bf16.msk.msra.mxu1 %vm1981_vm11, %v1779_v21 }
  0x38   : > { %1559 = vmatprep.subr.bf16.mxu1 %v1777_v13 }
  0x39   : > { %616 = vrot.lane.b32.xlu0 %v611_v11, %s1775_s8  ;;  %675 = vrot.lane.b32.xlu1 %v1862_v8, %s1776_s9 }
  0x3b   : > { %1561 = vmatpush1.bf16.msk.msra.mxu1 %vm1991_vm3, %v1779_v21  ;;  %vm1129_vm3 = vcmp.lt.s32.totalorder %v947_v62, 14 }
  0x3c   : > { %1562 = vmatprep.subr.bf16.mxu1 %v1777_v13 }
  0x3d   : > { %677 = vrot.lane.b32.xlu0 %v1867_v9, %s1776_s9  ;;  %679 = vrot.lane.b32.xlu1 %v611_v11, %s1776_s9 }
  0x8f   : > { %v195_v34 = vpop.permute.xlu0 %194  ;;  %v305_v38 = vpop.permute.xlu1 %304 }
  0x93   : > { %v197_v39 = vpop.permute.xlu0 %196  ;;  %v307_v47 = vpop.permute.xlu1 %306 }
  0x94   : > { %1457 = vmatprep.subr.msk.bf16.mxu0 %vm2208_vm12, %v197_v39  ;;  %v199_v40 = vsel %vm198_vm14, %v195_v34, %v197_v39  ;;  %vm308_vm14 = vcmask 1031168  }
  0x95   : > { %v206_v42 = vsel %vm2208_vm12, %v199_v40, 0  ;;  %v309_v54 = vsel %vm308_vm14, %v305_v38, %v307_v47  ;;  %vm2005_vm14 = vmpackc.low %vm1125_vm9, %vm1778_vm1  ;;  %v1473_v40 = vld [vmem:[%s2203_s1 + $0x18] sm:$0xf] }
  0x96   : > { %212 = vmatpush1.bf16.msra.mxu0 %v206_v42  ;;  %v314_v59 = vsel %vm2208_vm12, %v309_v54, 0  ;;  %v2236_v61 = vsel %vm2005_vm14, 4294967295, %v2235_v61  ;;  %1564 = vmatpush1.bf16.msk.msra.mxu1 %vm2005_vm14, %v1779_v21  ;;  %vm2018_vm9 = vmpackc.low %vm1127_vm15, %vm1778_vm1  ;;  %vm1131_vm15 = vcmp.lt.s32.totalorder %v961_v2, 14  ;;  %vm2241_vm14 = vcmask 1041408  }
  0x97   : > { %1459 = vmatprep.subr.msk.bf16.mxu0 %vm2208_vm12, %v1867_v9  ;;  %v367_v60 = vpop.permute.xlu1 %366  ;;  %1565 = vmatprep.subr.bf16.mxu1 %v1777_v13  ;;  %v2238_v0 = vsel %vm2018_vm9, 4294967295, %v2237_v0  ;;  %v365_v1 = vpop.permute.xlu0 %364  ;;  %v2242_v9 = vmov 0 }
  0x99   : > { %1458 = vmatmul.mubr.msk.bf16.vlgmr.msra.gmra.mrb[0].mxu0 %vm2206_vm5, %v1456_v45  ;;  %v1476_v45 = vld [vmem:[%s2203_s1 + $0x1c] sm:$0xf] }
  0x9a   : > { %262 = vmatpush1.bf16.msra.mxu0 %v256_v46  ;;  %293 = vmatprep.mubr.bf16.mxu0 %v1768_v5 }
  0x9b   : > { %1462 = vmatprep.subr.msk.bf16.mxu0 %vm2208_vm12, %v307_v47  ;;  %1567 = vmatpush1.bf16.msk.msra.mxu1 %vm2018_vm9, %v1779_v21  ;;  %v427_v8 = vpop.permute.xlu1 %426  ;;  %vm2245_vm9 = vmmov %vm2241_vm14  ;;  %v425_v10 = vpop.permute.xlu0 %424  ;;  %v1479_v47 = vld [vmem:[%s2203_s1 + $0x20] sm:$0xf] }
  0x9c   : > { %1568 = vmatprep.subr.bf16.mxu1 %v1777_v13 }
  0x9f   : > { %v487_v15 = vpop.permute.xlu1 %486  ;;  %v485_v16 = vpop.permute.xlu0 %484 }
  0xa3   : > { %v545_v18 = vpop.permute.xlu0 %544  ;;  %v547_v24 = vpop.permute.xlu1 %546 }
  0xa5   : > { %1460 = vmatmul.mubr.msk.bf16.vlgmr.msra.gmra.mrb[0].mxu0 %vm2206_vm5, %v182_v58  ;;  %vm368_vm5 = vcmask 916480  }
  0xa6   : > { %320 = vmatpush1.bf16.msra.mxu0 %v314_v59  ;;  %351 = vmatprep.mubr.bf16.mxu0 %v1768_v5  ;;  %v369_v3 = vsel %vm368_vm5, %v365_v1, %v367_v60  ;;  %vm2040_vm5 = vmpackc.low %vm1131_vm15, %vm1778_vm1 }
  0xa7   : > { %1465 = vmatprep.subr.msk.bf16.mxu0 %vm2208_vm12, %v367_v60  ;;  %vm2027_vm12 = vmpackc.low %vm1129_vm3, %vm1778_vm1  ;;  %v374_v7 = vsel %vm2241_vm14, %v369_v3, 0  ;;  %v2243_v9 = vsel %vm2040_vm5, 4294967295, %v2242_v9  ;;  %vm2244_vm3 = vcmask 31744   ;;  %vm428_vm14 = vcmask 908288   ;;  %v613_v26 = vpop.permute.xlu0 %612  ;;  %v615_v29 = vpop.permute.xlu1 %614 }
  0xa8   : > { %1570 = vmatpush1.bf16.msk.msra.mxu1 %vm2027_vm12, %v1779_v21  ;;  %v429_v11 = vsel %vm428_vm14, %v425_v10, %v427_v8  ;;  %vm2246_vm1 = vmmov %vm2245_vm9 }
  0xa9   : > { %1571 = vmatprep.subr.bf16.mxu1 %v1777_v13  ;;  %v434_v14 = vsel %vm2246_vm1, %v429_v11, 0  ;;  %vm2247_vm15 = vmmov %vm2244_vm3 }
  0xaa   : > { %vm2249_vm14 = vmmov %vm2246_vm1 }
  0xab   : > { %v617_v30 = vpop.permute.xlu0 %616  ;;  %v676_v36 = vpop.permute.xlu1 %675 }
  0xac   : > { %1573 = vmatpush1.bf16.msk.msra.mxu1 %vm2040_vm5, %v1779_v21  ;;  %vm2253_vm5 = vmmov %vm2249_vm14 }
  0xad   : > { %1574 = vmatprep.subr.bf16.mxu1 %v1777_v13 }
  0xaf   : > { %v678_v38 = vpop.permute.xlu0 %677  ;;  %v680_v39 = vpop.permute.xlu1 %679 }
  0xb1   : > { %1463 = vmatmul.mubr.msk.bf16.vlgmr.msra.gmra.mrb[0].mxu0 %vm2244_vm3, %v1461_v6  ;;  %vm488_vm3 = vcmask 900096  }
  0xb2   : > { %380 = vmatpush1.bf16.msra.mxu0 %v374_v7  ;;  %411 = vmatprep.mubr.bf16.mxu0 %v1768_v5  ;;  %v489_v17 = vsel %vm488_vm3, %v485_v16, %v487_v15  ;;  %vm618_vm3 = vcmask 777216  }
  0xb3   : > { %1468 = vmatprep.subr.msk.bf16.mxu0 %vm2245_vm9, %v427_v8  ;;  %vm2248_vm9 = vmmov %vm2246_vm1  ;;  %v494_v23 = vsel %vm2249_vm14, %v489_v17, 0  ;;  %v620_v34 = vsel %vm618_vm3, %v615_v29, %v617_v30  ;;  %v619_v37 = vsel %vm618_vm3, %v613_v26, %v615_v29 }
  0xb4   : > { %vm2250_vm1 = vmmov %vm2247_vm15  ;;  %v625_v42 = vsel %vm2253_vm5, %v619_v37, 0 }
  0xbd   : > { %1466 = vmatmul.mubr.msk.bf16.vlgmr.msra.gmra.mrb[0].mxu0 %vm2247_vm15, %v1464_v12  ;;  %vm2251_vm15 = vmmov %vm2248_vm9 }
  0xbe   : > { %440 = vmatpush1.bf16.msra.mxu0 %v434_v14  ;;  %471 = vmatprep.mubr.bf16.mxu0 %v1768_v5 }
  0xbf   : > { %1471 = vmatprep.subr.msk.bf16.mxu0 %vm2248_vm9, %v487_v15  ;;  %vm2211_vm9 = vcmask 785408  }
  0xc0   : > { %v549_v27 = vsel %vm2211_vm9, %v545_v18, %v547_v24  ;;  %vm681_vm9 = vcmask 769024  }
  0xc1   : > { %v554_v33 = vsel %vm2249_vm14, %v549_v27, 0  ;;  %v683_v43 = vsel %vm681_vm9, %v678_v38, %v680_v39  ;;  %v682_v44 = vsel %vm681_vm9, %v676_v36, %v678_v38  ;;  %vm2259_vm9 = vcmask 785408  }
  0xc9   : > { %1469 = vmatmul.mubr.msk.bf16.vlgmr.msra.gmra.mrb[0].mxu0 %vm2250_vm1, %v1467_v19 }
  0xca   : > { %500 = vmatpush1.bf16.msra.mxu0 %v494_v23  ;;  %531 = vmatprep.mubr.bf16.mxu0 %v1768_v5 }
  0xcb   : > { %1474 = vmatprep.subr.msk.bf16.mxu0 %vm2251_vm15, %v547_v24  ;;  %vm2252_vm15 = vmmov %vm2249_vm14 }
  0xcc   : > { %vm2254_vm14 = vmmov %vm2250_vm1 }
  0xd5   : > { %1472 = vmatmul.mubr.msk.bf16.vlgmr.msra.gmra.mrb[0].mxu0 %vm2250_vm1, %v1470_v32  ;;  %vm2255_vm1 = vmmov %vm2253_vm5 }
  0xd6   : > { %560 = vmatpush1.bf16.msra.mxu0 %v554_v33  ;;  %591 = vmatprep.mubr.bf16.mxu0 %v1768_v5  ;;  %vm2256_vm3 = vmmov %vm2255_vm1 }
  0xd7   : > { %1477 = vmatprep.subr.msk.bf16.mxu0 %vm2252_vm15, %v620_v34  ;;  %v688_v46 = vsel %vm2256_vm3, %v682_v44, 0  ;;  %vm2257_vm15 = vmmov %vm2254_vm14 }
  0xd8   : > { %vm2258_vm5 = vmmov %vm2254_vm14 }
  0xe1   : > { %1475 = vmatmul.mubr.msk.bf16.vlgmr.msra.gmra.mrb[0].mxu0 %vm2254_vm14, %v1473_v40  ;;  %vm2260_vm14 = vmmov %vm2259_vm9 }
  0xe2   : > { %631 = vmatpush1.bf16.msra.mxu0 %v625_v42  ;;  %662 = vmatprep.mubr.bf16.mxu0 %v1768_v5 }
  0xe3   : > { %1480 = vmatprep.subr.msk.bf16.mxu0 %vm2255_vm1, %v683_v43  ;;  %vm2261_vm1 = vmmov %vm2259_vm9 }
  0xed   : > { %1478 = vmatmul.mubr.msk.bf16.vlgmr.msra.gmra.mrb[0].mxu0 %vm2257_vm15, %v1476_v45 }
  0xee   : > { %694 = vmatpush1.bf16.msra.mxu0 %v688_v46  ;;  %725 = vmatprep.mubr.bf16.mxu0 %v1768_v5 }
  0xf9   : > { %1481 = vmatmul.mubr.msk.bf16.vlgmr.msra.gmra.mrb[0].mxu0 %vm2258_vm5, %v1479_v47 }
 0x1cc   : > { %v727_v49 = vpop.f32.mrb[0].mxu0 }
 0x1cd   : > { %736 = vst [vmem:[%s2093_s19] sm:$0xff] %v727_v49  ;;  %v729_v50 = vpop.f32.mrb[1].mxu0  ;;  %v1261_v20 = vmul.f32 %v727_v49, %v727_v49 }
 0x1ce   : > { %738 = vst.msk [vmem:[%s2093_s19 + $0x8] sm:$0xff] %vm2259_vm9, %v729_v50  ;;  %v1262_v52 = vmul.f32 %v729_v50, %v729_v50  ;;  %v731_v5 = vpop.f32.mrb[2].mxu0  ;;  %1510 = vmatprep.mubr.msk.f32.mxu1 %vm2260_vm14, %v729_v50 }
 0x1cf   : > { %v732_v53 = vpop.f32.mrb[3].mxu0  ;;  %1256 = vmatmul.mubr.f32.vlgmr.msra.gmra.mrb[0].mxu1 %v727_v49 }
 0x1d0   : > { %1576 = vmatpush1.bf16.msk.msra.mxu1 %vm1890_vm2, %v1779_v21  ;;  %1525 = vmatprep.mubr.msk.f32.mxu1 %vm2261_vm1, %v1262_v52  ;;  %vm2262_vm2 = vnez %v2234_v55 }
 0x1d1   : > { %1577 = vmatprep.subr.bf16.mxu1 %v1777_v13 }
 0x1d4   : > { %1579 = vmatpush1.bf16.msk.msra.mxu1 %vm1899_vm4, %v1779_v21  ;;  %vm2263_vm4 = vnez %v2236_v61 }
 0x1d5   : > { %1580 = vmatprep.subr.bf16.mxu1 %v1777_v13 }
 0x1d8   : > { %1582 = vmatpush1.bf16.msk.msra.mxu1 %vm1909_vm6, %v1779_v21  ;;  %vm2264_vm6 = vnez %v2238_v0 }
 0x1d9   : > { %1583 = vmatprep.subr.bf16.mxu1 %v1777_v13 }
 0x1dc   : > { %1585 = vmatpush1.bf16.msk.msra.mxu1 %vm1919_vm8, %v1779_v21  ;;  %vm2265_vm8 = vnez %v2243_v9 }
 0x1dd   : > { %1586 = vmatprep.subr.bf16.mxu1 %v1777_v13 }
 0x1e0   : > { %1588 = vmatpush1.bf16.msk.msra.mxu1 %vm1929_vm10, %v1779_v21 }
 0x1e1   : > { %1589 = vmatprep.subr.bf16.mxu1 %v1777_v13 }
 0x1e4   : > { %1591 = vmatpush1.bf16.msk.msra.mxu1 %vm1939_vm13, %v1779_v21 }
 0x1e5   : > { %1592 = vmatprep.subr.bf16.mxu1 %v1777_v13 }
 0x1e8   : > { %1594 = vmatpush1.bf16.msk.msra.mxu1 %vm1950_vm0, %v1779_v21 }
 0x1e9   : > { %1595 = vmatprep.subr.bf16.mxu1 %v1777_v13 }
 0x1ec   : > { %1597 = vmatpush1.bf16.msk.msra.mxu1 %vm1968_vm7, %v1779_v21 }
 0x1ed   : > { %1598 = vmatprep.subr.bf16.mxu1 %v1777_v13 }
 0x1f0   : > { %1600 = vmatpush1.bf16.msk.msra.mxu1 %vm1981_vm11, %v1779_v21 }
 0x1f1   : > { %1601 = vmatprep.subr.bf16.mxu1 %v1777_v13 }
 0x1f4   : > { %1603 = vmatpush1.bf16.msk.msra.mxu1 %vm2262_vm2, %v1779_v21 }
 0x1f5   : > { %1604 = vmatprep.subr.bf16.mxu1 %v1777_v13 }
 0x1f8   : > { %1606 = vmatpush1.bf16.msk.msra.mxu1 %vm2263_vm4, %v1779_v21 }
 0x1f9   : > { %1607 = vmatprep.subr.bf16.mxu1 %v1777_v13 }
 0x1fc   : > { %1609 = vmatpush1.bf16.msk.msra.mxu1 %vm2264_vm6, %v1779_v21 }
 0x1fd   : > { %1610 = vmatprep.subr.bf16.mxu1 %v1777_v13 }
 0x200   : > { %1612 = vmatpush1.bf16.msk.msra.mxu1 %vm2027_vm12, %v1779_v21 }
 0x201   : > { %1613 = vmatprep.subr.bf16.mxu1 %v1777_v13 }
 0x204   : > { %1615 = vmatpush1.bf16.msk.msra.mxu1 %vm2265_vm8, %v1779_v21 }
 0x207   : > { %1331 = vmatmul.mubr.f32.vlgmr.msra.gmra.mrb[2].mxu1 %v1261_v20 }
 0x2a2   : > { %v1257_v22 = vpop.f32.mrb[0].mxu1 }
 0x2a3   : > { %v1259_v25 = vpop.f32.mrb[1].mxu1 }
 0x2a4   : > { %1716 = shalt.err (!%p1713_p3)
}
 0x2a5   : > { %s1717_s16 = scalar_lea.hbm %s2160_s28, 256  ;;  %s1721_s9 = scalar_lea.hbm %s2204_s2, 512 }
 0x2a6   : > { %p1718_p4 = scmp.ne.s32.totalorder %s2160_s28, %s1717_s16  ;;  %p1722_p9 = scmp.lt.u32.totalorder %s2160_s28, %s2204_s2 }
 0x2a7   : > { %p1723_p10 = scmp.lt.u32.totalorder %s1721_s9, %s1717_s16  ;;  %p1725_p12 = scmp.lt.u32.totalorder %s1717_s16, %s2160_s28 }
 0x2a8   : > { %p1719_p7 = pnand %p1718_p4, %p1840_p5 }
 0x2a9   : > { %p1724_p11 = por %p1723_p10, %p1722_p9 }
 0x2aa   : > { %p1720_p8 = pneg %p1719_p7 }
 0x2ab   : > { %p1726_p13 = por %p1725_p12, %p1724_p11 }
 0x2ad   : > { %p1727_p0 = pnand %p1726_p13, %p1720_p8 }
 0x2af   : > { %1730 = shalt.err (!%p1727_p0)
}
 0x2b0   : > { %1649 = dma.vmem_to_hbm [thread:$0]  (%p1840_p5), %s1364_s25, 256, %s2160_s28, %s1345_s29   ;;  %vm1340_vm10 = vcmask 7168   ;;  %vm1342_vm12 = vcmask 15360  }
 0x2b1   : > { %s1781_s17 = smov 1   ;;  %s1455_s19 = sshll.u32 %s1852_s24, 3 }
 0x2b2   : > { %s179_s27 = scalar_lea.vmem %s2205_s3, %s1455_s19 }
 0x2da   : > { %v1332_v13 = vpop.f32.mrb[2].mxu1 }
 0x2db   : > { %1337 = vrot.lane.b32.xlu0 %v1332_v13, %s1781_s17  ;;  %v1334_v21 = vpop.f32.mrb[3].mxu1 }
 0x34d   : > { %v1338_v28 = vpop.permute.xlu0 %1337 }
 0x34e   : > { %v1341_v31 = vsel %vm1340_vm10, %v1257_v22, %v1338_v28 }
 0x34f   : > { %1343 = vst.msk [vmem:[%s179_s27] sm:$0xff] %vm1342_vm12, %v1341_v31 }
 0x350 PF: > { %p1655_p1 = scmp.ge.s32.totalorder %s1765_s15, 2  ;;  %s1378_s22 = sand.u32 1, %s1753_s12  }
 0x351   : > { %s1379_s25 = scalar_lea.sflag [#allocation3], %s1378_s22 }
 0x352   : > { %p1652_p5 = pnand %p1655_p1, %p1844_p6 }
 0x354   : > { %1748 = dma.done.wait (!%p1652_p5), %s1379_s25, 256  }
 0x355   : > { %1750 = vsyncadd (!%p1652_p5), %s1379_s25, 4294967040  ;;  %p14_p2 = scmp.ge.s32.totalorder %s1827_s18, 4   ;;  %s2266_s12 = smov %s1757_s13 }
 0x356   : > { %s2267_s13 = smov %s1761_s14  ;;  %s2268_s14 = smov %s1838_s21 }
 0x357   : > { %s2269_s15 = smov %s1827_s18  ;;  %16 = sbr.rel (!%p14_p2) target bundleno = 3 (0x3), region = 83 }
 0x35e   :  { %1391 = vsyncpa [#allocation3], 1 }
 0x35f   :  { %1393 = vsyncpa [#allocation3 + $0x1], 1 }

</bundles_post_ra>
